<compile_context>
chip_gen: v6e
topology: v6e:2x2x1
jax: 0.10.0
libtpu: 0.0.40
codegen_flags: <defaults>
</compile_context>

<pallas_src>
import math
from functools import partial

import jax
import jax.numpy as jnp
from jax import lax
from jax.experimental import pallas as pl
from jax.experimental.pallas import tpu as pltpu

ACT_DTYPE = jnp.bfloat16           # storage dtype for weights / activations
_VMEM_LIMIT = 56 * 1024 * 1024     # scoped-VMEM budget; < v7x 64 MiB physical


def _round_up(x, m):
    return (x + m - 1) // m * m


# -----------------------------------------------------------------------------
# Small helpers (run inside kernels, on values already in vregs)
# -----------------------------------------------------------------------------

def _gelu_tanh(x):
    # TODO(synk): HF RoBERTa uses exact (erf) GELU; tanh approximation keeps
    # the transcendental on the EUP and is guaranteed to lower in Mosaic.
    c = math.sqrt(2.0 / math.pi)
    return 0.5 * x * (1.0 + jnp.tanh(c * (x + 0.044715 * x * x * x)))


def _layernorm_f32(y, g, b, eps):
    # y is f32; statistics stay in f32 regardless of storage dtype.
    mu = jnp.mean(y, axis=-1, keepdims=True)
    yc = y - mu
    var = jnp.mean(yc * yc, axis=-1, keepdims=True)
    return yc * lax.rsqrt(var + eps) * g + b


def _pick_tm(M, max_tile):
    # M is always a multiple of 8 (sequence padded in forward()), so this
    # search always terminates with a multiple-of-8 tile >= 8 that divides M.
    tm = max(min(M, max_tile) - min(M, max_tile) % 8, 8)
    while M % tm:
        tm -= 8
    return tm


def _pick_ti(I, max_ti=1024):
    # Intermediate-dim tile: full extent if small, else a 128-multiple divisor.
    if I <= max_ti:
        return I
    ti = max_ti - max_ti % 128
    while ti > 128 and I % ti:
        ti -= 128
    return ti if I % ti == 0 else I


def _heads_per_group(num_heads, head_dim):
    # Group heads so one attention block is a 128-lane slab (2 heads/group at
    # head_dim=64) or the full hidden width when hidden < 128 (toy config).
    hpg = max(1, min(num_heads, 128 // head_dim)) if head_dim <= 128 else 1
    while num_heads % hpg:
        hpg -= 1
    return hpg


# -----------------------------------------------------------------------------
# Single-buffering of constant-index blocks (probe once, fall back if rejected)
# -----------------------------------------------------------------------------

def _probe_single_buffer():
    if not hasattr(pl, "Buffered"):
        return None
    try:
        mode = pl.Buffered(1)

        def k(x_ref, w_ref, o_ref):
            o_ref[...] = x_ref[...] + w_ref[...]

        out = pl.pallas_call(
            k,
            out_shape=jax.ShapeDtypeStruct((16, 128), jnp.float32),
            grid=(2,),
            in_specs=[pl.BlockSpec((8, 128), lambda i: (i, 0)),
                      pl.BlockSpec((1, 128), lambda i: (0, 0),
                                   pipeline_mode=mode)],
            out_specs=pl.BlockSpec((8, 128), lambda i: (i, 0)),
        )(jnp.ones((16, 128), jnp.float32), jnp.ones((1, 128), jnp.float32))
        jax.block_until_ready(out)
        return mode
    except Exception:
        return None


_SINGLE_BUF = _probe_single_buffer()


def _const_spec(shape, index_map):
    """BlockSpec for a block that is identical at every grid step."""
    if _SINGLE_BUF is not None:
        return pl.BlockSpec(shape, index_map, pipeline_mode=_SINGLE_BUF)
    return pl.BlockSpec(shape, index_map)


_VMEM_SPEC = pl.BlockSpec(memory_space=pltpu.MemorySpace.VMEM)


# -----------------------------------------------------------------------------
# Kernels
# -----------------------------------------------------------------------------

def _qkv_kernel(x_ref, w_ref, b_ref, q_ref, k_ref, v_ref, *, H):
    # One fused Q|K|V matmul; three lane-aligned stores.
    y = jnp.dot(x_ref[...], w_ref[...], preferred_element_type=jnp.float32)
    y = y + b_ref[...]
    q_ref[...] = y[:, :H].astype(q_ref.dtype)
    k_ref[...] = y[:, H:2 * H].astype(k_ref.dtype)
    v_ref[...] = y[:, 2 * H:].astype(v_ref.dtype)


def qkv_proj(x, w, b):
    M, H = x.shape
    N = w.shape[1]          # 3H
    tm = _pick_tm(M, 512)
    out = tuple(jax.ShapeDtypeStruct((M, H), x.dtype) for _ in range(3))
    return pl.pallas_call(
        partial(_qkv_kernel, H=H),
        out_shape=out,
        grid=(M // tm,),
        in_specs=[pl.BlockSpec((tm, H), lambda i: (i, 0)),
                  _const_spec((H, N), lambda i: (0, 0)),
                  _const_spec((1, N), lambda i: (0, 0))],
        out_specs=[pl.BlockSpec((tm, H), lambda i: (i, 0))] * 3,
        compiler_params=pltpu.CompilerParams(
            dimension_semantics=("parallel",),
            vmem_limit_bytes=_VMEM_LIMIT),
    )(x, w, b.reshape(1, N))


def _attn_kernel(q_ref, k_ref, v_ref, bias_ref, o_ref, *, heads, head_dim, scale):
    # Blocks: q/k/v/o = [1, S, GW] (GW = heads*head_dim lanes of this group),
    # bias = [1, 1, S] (broadcast over heads and query rows, built once).
    S = q_ref.shape[1]
    # Fold the softmax scale into q (an [S,GW] multiply, not an [S,S] one).
    q = (q_ref[0].astype(jnp.float32) * scale).astype(q_ref.dtype)
    qh = q.reshape(S, heads, head_dim).swapaxes(0, 1)            # [h, S, d]
    kh = k_ref[0].reshape(S, heads, head_dim).swapaxes(0, 1)
    vh = v_ref[0].reshape(S, heads, head_dim).swapaxes(0, 1)
    bias = bias_ref[0].astype(jnp.float32)[None]                 # [1, 1, S]

    # Batched QK^T / PV over the heads in this group; f32 accumulation.
    s = jnp.einsum("hqd,hkd->hqk", qh, kh,
                   preferred_element_type=jnp.float32) + bias    # [h, S, S]
    m = jnp.max(s, axis=-1, keepdims=True)
    p = jnp.exp(s - m)
    inv = pl.reciprocal(jnp.sum(p, axis=-1, keepdims=True), approx=True)
    p = (p * inv).astype(vh.dtype)
    ctx = jnp.einsum("hqk,hkd->hqd", p, vh,
                     preferred_element_type=jnp.float32)         # [h, S, d]
    # Single lane-dense store of this head group's slab.
    o_ref[0] = ctx.swapaxes(0, 1).reshape(S, heads * head_dim).astype(o_ref.dtype)


def attention(q, k, v, bias, num_heads, head_dim):
    B, S, H = q.shape
    hpg = _heads_per_group(num_heads, head_dim)
    groups = num_heads // hpg
    gw = hpg * head_dim
    return pl.pallas_call(
        partial(_attn_kernel, heads=hpg, head_dim=head_dim,
                scale=1.0 / math.sqrt(head_dim)),
        out_shape=jax.ShapeDtypeStruct((B, S, H), q.dtype),
        grid=(B, groups),
        in_specs=[pl.BlockSpec((1, S, gw), lambda b, g: (b, 0, g)),
                  pl.BlockSpec((1, S, gw), lambda b, g: (b, 0, g)),
                  pl.BlockSpec((1, S, gw), lambda b, g: (b, 0, g)),
                  pl.BlockSpec((1, 1, S), lambda b, g: (b, 0, 0))],
        out_specs=pl.BlockSpec((1, S, gw), lambda b, g: (b, 0, g)),
        compiler_params=pltpu.CompilerParams(
            dimension_semantics=("parallel", "parallel"),
            vmem_limit_bytes=_VMEM_LIMIT),
    )(q, k, v, bias)


def _proj_res_ln_kernel(x_ref, w_ref, b_ref, r_ref, g_ref, bb_ref, o_ref, *, eps):
    # Fused: (ctx @ Wo + bo) + residual, then LayerNorm (f32 statistics).
    y = jnp.dot(x_ref[...], w_ref[...], preferred_element_type=jnp.float32)
    y = y + b_ref[...] + r_ref[...].astype(jnp.float32)
    o_ref[...] = _layernorm_f32(y, g_ref[...], bb_ref[...], eps).astype(o_ref.dtype)


def proj_residual_ln(x, w, b, residual, gamma, beta, eps=1e-5):
    M, K = x.shape
    N = w.shape[1]
    tm = _pick_tm(M, 512)
    return pl.pallas_call(
        partial(_proj_res_ln_kernel, eps=eps),
        out_shape=jax.ShapeDtypeStruct((M, N), x.dtype),
        grid=(M // tm,),
        in_specs=[pl.BlockSpec((tm, K), lambda i: (i, 0)),
                  _const_spec((K, N), lambda i: (0, 0)),
                  _const_spec((1, N), lambda i: (0, 0)),
                  pl.BlockSpec((tm, N), lambda i: (i, 0)),
                  _const_spec((1, N), lambda i: (0, 0)),
                  _const_spec((1, N), lambda i: (0, 0))],
        out_specs=pl.BlockSpec((tm, N), lambda i: (i, 0)),
        compiler_params=pltpu.CompilerParams(
            dimension_semantics=("parallel",),
            vmem_limit_bytes=_VMEM_LIMIT),
    )(x, w, b.reshape(1, N), residual, gamma.reshape(1, N), beta.reshape(1, N))


def _ffn_kernel(x_ref, w1_ref, b1_ref, w2_ref, b2_ref, g_ref, bb_ref,
                o_ref, acc_ref, *, eps):
    # Fused FFN, tiled over the intermediate dim (grid axis j, 'arbitrary'):
    #   acc += GELU(x @ W_in[:, j] + b_in[j]) @ W_out[j, :]
    # finalize: + b_out + residual(x), LayerNorm.  The [tm, ti] GELU temp and
    # the weight tiles are the only large live values -> bounded VMEM.
    j = pl.program_id(1)

    @pl.when(j == 0)
    def _():
        acc_ref[...] = jnp.zeros_like(acc_ref)

    h = jnp.dot(x_ref[...], w1_ref[...], preferred_element_type=jnp.float32)
    h = _gelu_tanh(h + b1_ref[...])
    acc_ref[...] += jnp.dot(h.astype(w2_ref.dtype), w2_ref[...],
                            preferred_element_type=jnp.float32)

    @pl.when(j == pl.num_programs(1) - 1)
    def _():
        y = acc_ref[...] + b2_ref[...] + x_ref[...].astype(jnp.float32)
        o_ref[...] = _layernorm_f32(y, g_ref[...], bb_ref[...], eps).astype(o_ref.dtype)


def ffn_residual_ln(x, w_in, b_in, w_out, b_out, gamma, beta, eps=1e-5):
    M, H = x.shape
    I = w_in.shape[1]
    tm = _pick_tm(M, 256)      # smaller row tile than qkv/proj (VMEM-heavier)
    ti = _pick_ti(I, 1024)
    return pl.pallas_call(
        partial(_ffn_kernel, eps=eps),
        out_shape=jax.ShapeDtypeStruct((M, H), x.dtype),
        grid=(M // tm, I // ti),
        in_specs=[pl.BlockSpec((tm, H), lambda i, j: (i, 0)),
                  pl.BlockSpec((H, ti), lambda i, j: (0, j)),
                  pl.BlockSpec((1, ti), lambda i, j: (0, j)),
                  pl.BlockSpec((ti, H), lambda i, j: (j, 0)),
                  _const_spec((1, H), lambda i, j: (0, 0)),
                  _const_spec((1, H), lambda i, j: (0, 0)),
                  _const_spec((1, H), lambda i, j: (0, 0))],
        out_specs=pl.BlockSpec((tm, H), lambda i, j: (i, 0)),
        scratch_shapes=[pltpu.VMEM((tm, H), jnp.float32)],
        compiler_params=pltpu.CompilerParams(
            dimension_semantics=("parallel", "arbitrary"),
            vmem_limit_bytes=_VMEM_LIMIT),
    )(x, w_in, b_in.reshape(1, I), w_out, b_out.reshape(1, H),
      gamma.reshape(1, H), beta.reshape(1, H))


def _ln_kernel(x_ref, g_ref, b_ref, o_ref, *, eps):
    x = x_ref[...].astype(jnp.float32)
    o_ref[...] = _layernorm_f32(x, g_ref[...], b_ref[...], eps).astype(o_ref.dtype)


def layernorm(x, gamma, beta, eps=1e-5):
    M, H = x.shape
    tm = _pick_tm(M, 512)
    return pl.pallas_call(
        partial(_ln_kernel, eps=eps),
        out_shape=jax.ShapeDtypeStruct((M, H), x.dtype),
        grid=(M // tm,),
        in_specs=[pl.BlockSpec((tm, H), lambda i: (i, 0)),
                  _const_spec((1, H), lambda i: (0, 0)),
                  _const_spec((1, H), lambda i: (0, 0))],
        out_specs=pl.BlockSpec((tm, H), lambda i: (i, 0)),
        compiler_params=pltpu.CompilerParams(
            dimension_semantics=("parallel",)),
    )(x, gamma.reshape(1, H), beta.reshape(1, H))


def _head_kernel(x_ref, w1_ref, b1_ref, w2_ref, b2_ref, o_ref):
    # Classifier head: logits = relu(x @ W1 + b1) @ W2p + b2p  (W2 lane-padded)
    h = jnp.dot(x_ref[...], w1_ref[...], preferred_element_type=jnp.float32)
    h = jnp.maximum(h + b1_ref[...], 0.0).astype(w2_ref.dtype)
    y = jnp.dot(h, w2_ref[...], preferred_element_type=jnp.float32) + b2_ref[...]
    o_ref[...] = y.astype(o_ref.dtype)


def classifier_head(cls_hidden, w1, b1, w2p, b2p, num_labels):
    B, H = cls_hidden.shape
    npad = w2p.shape[1]
    out = pl.pallas_call(
        _head_kernel,
        out_shape=jax.ShapeDtypeStruct((B, npad), jnp.float32),
        in_specs=[_VMEM_SPEC] * 5,
        out_specs=_VMEM_SPEC,
    )(cls_hidden, w1, b1.reshape(1, H), w2p, b2p.reshape(1, npad))
    return out[:, :num_labels]


# -----------------------------------------------------------------------------
# Synthetic RoBERTa-style model
# -----------------------------------------------------------------------------

class Config:
    # Toy shapes (roberta-large: hidden=1024, heads=16, head_dim=64,
    # intermediate=4096, layers=24 — the kernels are sized for both).
    vocab_size = 100
    hidden = 32
    num_heads = 4
    head_dim = 8
    intermediate = 64
    num_layers = 2
    num_labels = 3
    max_pos = 64


def init_params(cfg, key):
    ks = iter(jax.random.split(key, 64))
    std = 0.02
    H = cfg.hidden

    def w(shape):
        return (jax.random.normal(next(ks), shape, jnp.float32) * std).astype(ACT_DTYPE)

    # Classifier-head W2/b2 lane-padded to a 128 slab ONCE at init time.
    npad = _round_up(max(cfg.num_labels, 1), 128)
    w2 = jax.random.normal(next(ks), (H, cfg.num_labels), jnp.float32) * std
    head_w2p = jnp.zeros((H, npad), jnp.float32).at[:, :cfg.num_labels].set(w2).astype(ACT_DTYPE)
    head_b2p = jnp.zeros((npad,), jnp.float32)

    p = {
        "word_emb": w((cfg.vocab_size, H)),
        "pos_emb": w((cfg.max_pos, H)),
        "type_emb": w((1, H)),
        "emb_ln_g": jnp.ones((H,), jnp.float32),
        "emb_ln_b": jnp.zeros((H,), jnp.float32),
        "layers": [],
        "head_w1": w((H, H)),
        "head_b1": jnp.zeros((H,), jnp.float32),
        "head_w2p": head_w2p,
        "head_b2p": head_b2p,
    }
    for _ in range(cfg.num_layers):
        p["layers"].append({
            "wqkv": w((H, 3 * H)),                          # fused Q|K|V weight
            "bqkv": jnp.zeros((3 * H,), jnp.float32),
            "wo": w((H, H)),
            "bo": jnp.zeros((H,), jnp.float32),
            "ln1_g": jnp.ones((H,), jnp.float32),
            "ln1_b": jnp.zeros((H,), jnp.float32),
            "w_in": w((H, cfg.intermediate)),
            "b_in": jnp.zeros((cfg.intermediate,), jnp.float32),
            "w_out": w((cfg.intermediate, H)),
            "b_out": jnp.zeros((H,), jnp.float32),
            "ln2_g": jnp.ones((H,), jnp.float32),
            "ln2_b": jnp.zeros((H,), jnp.float32),
        })
    return p


def encoder_layer(h_flat, lp, bias, B, S, cfg):
    H = cfg.hidden
    M = B * S
    # 1) fused QKV projection -> three lane-aligned [M, H] bf16 activations
    q, k, v = qkv_proj(h_flat, lp["wqkv"], lp["bqkv"])
    # 2) attention over a (batch, head-group) grid; merged lane-dense output
    ctx = attention(q.reshape(B, S, H), k.reshape(B, S, H), v.reshape(B, S, H),
                    bias, cfg.num_heads, cfg.head_dim)
    # TODO(synk): on v5e, fusing this projection directly into the attention
    # kernel would remove the bf16 ctx HBM round-trip entirely; kept separate
    # here to preserve the (batch, head-group) attention grid.
    h1 = proj_residual_ln(ctx.reshape(M, H), lp["wo"], lp["bo"], h_flat,
                          lp["ln1_g"], lp["ln1_b"])
    # 4) FFN fused + tiled over the intermediate dim (f32 VMEM accumulator)
    h2 = ffn_residual_ln(h1, lp["w_in"], lp["b_in"], lp["w_out"], lp["b_out"],
                         lp["ln2_g"], lp["ln2_b"])
    return h2


def forward(params, input_ids, attention_mask, cfg):
    B, S = input_ids.shape
    H = cfg.hidden
    # Pad the sequence to a multiple of 8 so every M=B*S row-tile is
    # (8,*)-aligned; padded positions are masked out as attention keys.
    S_pad = _round_up(S, 8)
    if S_pad != S:
        input_ids = jnp.pad(input_ids, ((0, 0), (0, S_pad - S)))
        attention_mask = jnp.pad(attention_mask, ((0, 0), (0, S_pad - S)))
    M = B * S_pad

    # Embeddings (lookup is glue; LN runs in a Pallas kernel, f32 stats)
    # TODO(synk): RoBERTa's padding_idx-offset position ids are not modeled.
    emb = (jnp.take(params["word_emb"], input_ids, axis=0).astype(jnp.float32)
           + params["pos_emb"][:S_pad].astype(jnp.float32)[None]
           + params["type_emb"].astype(jnp.float32)[None])
    h = layernorm(emb.reshape(M, H).astype(ACT_DTYPE),
                  params["emb_ln_g"], params["emb_ln_b"])

    # Additive key-padding bias, kept at [B, 1, S]; broadcast over heads/rows
    # happens inside the attention kernel (never materialized per head).
    bias = ((1.0 - attention_mask.astype(jnp.float32)) * -1e9)[:, None, :]

    for lp in params["layers"]:
        h = encoder_layer(h, lp, bias, B, S_pad, cfg)

    # cls_hidden = last_hidden[:, 0]; dropout is identity at inference
    cls_hidden = h.reshape(B, S_pad, H)[:, 0]
    logits = classifier_head(cls_hidden, params["head_w1"], params["head_b1"],
                             params["head_w2p"], params["head_b2p"],
                             cfg.num_labels)
    return logits


# -----------------------------------------------------------------------------
# Main
# -----------------------------------------------------------------------------

if __name__ == "__main__":
    cfg = Config()
    B, S = 2, 8

    key = jax.random.PRNGKey(0)
    k_param, k_ids = jax.random.split(key)
    params = init_params(cfg, k_param)

    input_ids = jax.random.randint(k_ids, (B, S), 0, cfg.vocab_size, dtype=jnp.int32)
    attention_mask = jnp.array(
        [[1, 1, 1, 1, 1, 1, 1, 1],
         [1, 1, 1, 1, 1, 1, 0, 0]], dtype=jnp.int32)  # second example padded

    logits = forward(params, input_ids, attention_mask, cfg)
    logits = jax.block_until_ready(logits)
    assert logits.shape == (B, cfg.num_labels)
    assert bool(jnp.all(jnp.isfinite(logits)))
    print("KERNEL_OK")
</pallas_src>

<mosaic_0001>
module attributes {stable_mosaic.version = 11 : i64} {
  func.func @k(%arg0: i32, %arg1: memref<8x128xf32, #tpu.memory_space<vmem>>, %arg2: memref<1x128xf32, #tpu.memory_space<vmem>>, %arg3: memref<8x128xf32, #tpu.memory_space<vmem>>) attributes {dimension_semantics = [#tpu.dimension_semantics<arbitrary>], iteration_bounds = array<i64: 2>, scalar_prefetch = 0 : i64, scratch_operands = 0 : i64, tpu.core_type = #tpu.core_type<tc>, window_params = [{transform_indices = @transform_0, window_bounds = array<i64: 8, 128>}, {pipeline_mode = #tpu.pipeline_mode<synchronous>, transform_indices = @transform_1, window_bounds = array<i64: 1, 128>}, {transform_indices = @transform_2, window_bounds = array<i64: 8, 128>}]} {
    %c0 = arith.constant 0 : index
    %c0_0 = arith.constant 0 : index
    %0 = vector.load %arg1[%c0, %c0_0] : memref<8x128xf32, #tpu.memory_space<vmem>>, vector<8x128xf32>
    %c0_1 = arith.constant 0 : index
    %c0_2 = arith.constant 0 : index
    %1 = vector.load %arg2[%c0_1, %c0_2] : memref<1x128xf32, #tpu.memory_space<vmem>>, vector<1x128xf32>
    %2 = vector.broadcast %1 : vector<1x128xf32> to vector<8x128xf32>
    %3 = arith.addf %0, %2 : vector<8x128xf32>
    %c0_3 = arith.constant 0 : index
    %c0_4 = arith.constant 0 : index
    %4 = vector.load %arg3[%c0_3, %c0_4] : memref<8x128xf32, #tpu.memory_space<vmem>>, vector<8x128xf32>
    tpu.vector_store %arg3[%c0_3, %c0_4], %3 {strides = array<i32>} : memref<8x128xf32, #tpu.memory_space<vmem>>, vector<8x128xf32>,
    return
  }
  func.func @transform_0(%arg0: i32) -> (i32, i32) {
    %c0_i32 = arith.constant 0 : i32
    %c0_i32_0 = arith.constant 0 : i32
    return %arg0, %c0_i32 : i32, i32
  }
  func.func @transform_1(%arg0: i32) -> (i32, i32) {
    %c0_i32 = arith.constant 0 : i32
    %c0_i32_0 = arith.constant 0 : i32
    %c0_i32_1 = arith.constant 0 : i32
    return %c0_i32, %c0_i32_0 : i32, i32
  }
  func.func @transform_2(%arg0: i32) -> (i32, i32) {
    %c0_i32 = arith.constant 0 : i32
    %c0_i32_0 = arith.constant 0 : i32
    return %arg0, %c0_i32 : i32, i32
  }
}

module attributes {stable_mosaic.version = 11 : i64} {
  func.func @_ln_kernel(%arg0: i32, %arg1: memref<16x32xbf16, #tpu.memory_space<vmem>>, %arg2: memref<1x32xf32, #tpu.memory_space<vmem>>, %arg3: memref<1x32xf32, #tpu.memory_space<vmem>>, %arg4: memref<16x32xbf16, #tpu.memory_space<vmem>>) attributes {dimension_semantics = [#tpu.dimension_semantics<parallel>], iteration_bounds = array<i64: 1>, scalar_prefetch = 0 : i64, scratch_operands = 0 : i64, tpu.core_type = #tpu.core_type<tc>, window_params = [{transform_indices = @transform_0, window_bounds = array<i64: 16, 32>}, {pipeline_mode = #tpu.pipeline_mode<synchronous>, transform_indices = @transform_1, window_bounds = array<i64: 1, 32>}, {pipeline_mode = #tpu.pipeline_mode<synchronous>, transform_indices = @transform_2, window_bounds = array<i64: 1, 32>}, {transform_indices = @transform_3, window_bounds = array<i64: 16, 32>}]} {
    %c0 = arith.constant 0 : index
    %c0_0 = arith.constant 0 : index
    %0 = vector.load %arg1[%c0, %c0_0] : memref<16x32xbf16, #tpu.memory_space<vmem>>, vector<16x32xbf16>
    %1 = arith.extf %0 : vector<16x32xbf16> to vector<16x32xf32>
    %c0_1 = arith.constant 0 : index
    %c0_2 = arith.constant 0 : index
    %2 = vector.load %arg2[%c0_1, %c0_2] : memref<1x32xf32, #tpu.memory_space<vmem>>, vector<1x32xf32>
    %c0_3 = arith.constant 0 : index
    %c0_4 = arith.constant 0 : index
    %3 = vector.load %arg3[%c0_3, %c0_4] : memref<1x32xf32, #tpu.memory_space<vmem>>, vector<1x32xf32>
    %cst = arith.constant dense<0.000000e+00> : vector<16xf32>
    %4 = vector.multi_reduction <add>, %1, %cst [1] : vector<16x32xf32> to vector<16xf32>
    %5 = vector.shape_cast %4 : vector<16xf32> to vector<16x1xf32>
    %cst_5 = arith.constant 3.200000e+01 : f32
    %6 = vector.broadcast %cst_5 : f32 to vector<16x1xf32>
    %7 = arith.divf %5, %6 : vector<16x1xf32>
    %8 = vector.broadcast %7 : vector<16x1xf32> to vector<16x32xf32>
    %9 = arith.subf %1, %8 : vector<16x32xf32>
    %10 = arith.mulf %9, %9 : vector<16x32xf32>
    %cst_6 = arith.constant dense<0.000000e+00> : vector<16xf32>
    %11 = vector.multi_reduction <add>, %10, %cst_6 [1] : vector<16x32xf32> to vector<16xf32>
    %12 = vector.shape_cast %11 : vector<16xf32> to vector<16x1xf32>
    %cst_7 = arith.constant 3.200000e+01 : f32
    %13 = vector.broadcast %cst_7 : f32 to vector<16x1xf32>
    %14 = arith.divf %12, %13 : vector<16x1xf32>
    %cst_8 = arith.constant 9.99999974E-6 : f32
    %15 = vector.broadcast %cst_8 : f32 to vector<16x1xf32>
    %16 = arith.addf %14, %15 : vector<16x1xf32>
    %17 = math.rsqrt %16 : vector<16x1xf32>
    %18 = vector.broadcast %17 : vector<16x1xf32> to vector<16x32xf32>
    %19 = arith.mulf %9, %18 : vector<16x32xf32>
    %20 = vector.broadcast %2 : vector<1x32xf32> to vector<16x32xf32>
    %21 = arith.mulf %19, %20 : vector<16x32xf32>
    %22 = vector.broadcast %3 : vector<1x32xf32> to vector<16x32xf32>
    %23 = arith.addf %21, %22 : vector<16x32xf32>
    %24 = arith.truncf %23 : vector<16x32xf32> to vector<16x32xbf16>
    %c0_9 = arith.constant 0 : index
    %c0_10 = arith.constant 0 : index
    %25 = vector.load %arg4[%c0_9, %c0_10] : memref<16x32xbf16, #tpu.memory_space<vmem>>, vector<16x32xbf16>
    tpu.vector_store %arg4[%c0_9, %c0_10], %24 {strides = array<i32>} : memref<16x32xbf16, #tpu.memory_space<vmem>>, vector<16x32xbf16>,
    return
  }
  func.func @transform_0(%arg0: i32) -> (i32, i32) {
    %c0_i32 = arith.constant 0 : i32
    %c0_i32_0 = arith.constant 0 : i32
    return %arg0, %c0_i32 : i32, i32
  }
  func.func @transform_1(%arg0: i32) -> (i32, i32) {
    %c0_i32 = arith.constant 0 : i32
    %c0_i32_0 = arith.constant 0 : i32
    %c0_i32_1 = arith.constant 0 : i32
    return %c0_i32, %c0_i32_0 : i32, i32
  }
  func.func @transform_2(%arg0: i32) -> (i32, i32) {
    %c0_i32 = arith.constant 0 : i32
    %c0_i32_0 = arith.constant 0 : i32
    %c0_i32_1 = arith.constant 0 : i32
    return %c0_i32, %c0_i32_0 : i32, i32
  }
  func.func @transform_3(%arg0: i32) -> (i32, i32) {
    %c0_i32 = arith.constant 0 : i32
    %c0_i32_0 = arith.constant 0 : i32
    return %arg0, %c0_i32 : i32, i32
  }
}

</mosaic_0001>

<bundles_post_ra>
// kernel: tpu_custom_call.1
= control target key start
LH: loop header
LB: loop body
LE: loop exit
PB: predicated region body
PF: predicated region fallthrough
CT: control target
= control target key end

     0   :  { %7 = vsyncpa [#allocation3], 0  ;;  %s567_s0 = inlined_call_operand.hbm [shape: f32[16,128], index: 0, kind: input, shape index: {}]   ;;  %s568_s1 = inlined_call_operand.vmem [shape: f32[1,128], index: 1, kind: input, shape index: {}]   ;;  %s569_s2 = inlined_call_operand.hbm [shape: f32[16,128], index: 2, kind: output, shape index: {}]  }
   0x1   :  { %9 = vsyncpa [#allocation3 + $0x1], 0 }
   0x2   :  { %10 = vsyncpa [#allocation4], 0 }
   0x3   :  { %12 = vsyncpa [#allocation4 + $0x1], 0  ;;  %s423_s9 = smov 0   ;;  %s425_s10 = smov 0  }
   0x4   :  { %s427_s11 = smov 0   ;;  %s429_s12 = smov 0  }
   0x5 LB: > { %s444_s13 = sadd.s32 4294967295, %s404_s12   ;;  %s253_s14 = sadd.s32 4294967294, %s404_s12   ;;  %s404_s12 = sphi %s429_s12, %s586_s12   ;;  %s400_s11 = sphi %s427_s11, %s585_s11   ;;  %s396_s10 = sphi %s425_s10, %s584_s10   ;;  %s392_s9 = sphi %s423_s9, %s583_s9  }
   0x6   : > { %s448_s15 = sadd.s32 1, %s404_s12   ;;  %s25_s16 = sadd.s32 1, %s400_s11 }
   0x7   : > { %s22_s17 = ssub.s32 %s404_s12, %s448_s15  ;;  %p32_p0 = scmp.ne.s32.totalorder %s400_s11, %s396_s10 }
   0x8   : > { %p23_p1 = scmp.eq.s32.totalorder %s22_s17, 0  ;;  %p33_p2 = scmp.eq.s32.totalorder %s404_s12, 0 }
   0x9   : > { %p38_p3 = scmp.ne.s32.totalorder %s396_s10, %s392_s9  ;;  %p39_p4 = scmp.eq.s32.totalorder %s444_s13, 0 }
   0xa   : > { %s460_s18 = scalar_select %p23_p1, %s400_s11, %s25_s16  }
   0xb   : > { %p462_p5 = por %p33_p2, %p32_p0  ;;  %p466_p6 = por %p39_p4, %p38_p3 }
   0xc   : > { %p83_p7 = scmp.eq.s32.totalorder %s444_s13, 1  ;;  %p89_p8 = scmp.eq.s32.totalorder %s253_s14, 1 }
   0xd   : > { %s573_s20 = scalar_select %p466_p6, 1, 0 }
   0xe   : > { %p278_p10 = scmp.lt.s32.totalorder %s404_s12, 2  ;;  %p473_p11 = por %p83_p7, %p32_p0 }
   0xf   : > { %p477_p12 = por %p89_p8, %p38_p3  ;;  %s112_s23 = sand.u32 1, %s400_s11  }
  0x10   : > { %s574_s21 = scalar_select %p473_p11, 1, 0 }
  0x11   : > { %s575_s22 = scalar_select %p477_p12, 1, 0 }
  0x12   : > { %s257_s24 = sshll.u32 %s404_s12, 7  ;;  %s256_s25 = sshll.u32 %s112_s23, 3 }
  0x13   : > { %s486_s28 = scalar_lea.hbm %s567_s0, %s257_s24  ;;  %s116_s29 = scalar_lea.vmem [#allocation2], %s256_s25 }
  0x14   : > { %s123_s30 = sshll.u32 %s116_s29, 4  ;;  %p490_p13 = pnand %p278_p10, %p462_p5  ;;  %s494_s30 = int_to_ptr.vmem [resolvable:$true] %s123_s30 }
  0x15   : > { %s113_s4 = scalar_lea.sflag [#allocation3], %s112_s23  ;;  %s312_s5 = scalar_lea.hbm %s486_s28, 128 }
  0x16   : > { %p313_p2 = scmp.ne.s32.totalorder %s486_s28, %s312_s5  ;;  %p314_p3 = pneg %p490_p13 }
  0x17   : > { %s317_s8 = scalar_lea.hbm %s567_s0, 256  ;;  %p318_p5 = scmp.lt.s32.totalorder %s486_s28, %s567_s0 }
  0x18   : > { %p315_p4 = pnand %p314_p3, %p313_p2  ;;  %p319_p8 = scmp.lt.s32.totalorder %s317_s8, %s312_s5 }
  0x1a   : > { %p316_p7 = pneg %p315_p4  ;;  %p320_p10 = por %p319_p8, %p318_p5 }
  0x1c   : > { %p321_p9 = pnand %p320_p10, %p316_p7 }
  0x1e   : > { %324 = shalt.err (!%p321_p9)
}
  0x1f   : > { %s325_s17 = scalar_lea.vmem %s494_s30, 128  ;;  %s406_s19 = smov [#allocation2]  }
  0x20   : > { %p326_p0 = scmp.ne.s32.totalorder %s494_s30, %s325_s17  ;;  %s330_s23 = sshll.u32 %s406_s19, 4  ;;  %s331_s23 = int_to_ptr.vmem [resolvable:$false] %s330_s23 }
  0x21   : > { %s332_s24 = scalar_lea.vmem %s331_s23, 256  ;;  %p333_p4 = scmp.lt.s32.totalorder %s494_s30, %s331_s23 }
  0x22   : > { %p328_p1 = pnand %p326_p0, %p314_p3  ;;  %p334_p12 = scmp.lt.s32.totalorder %s332_s24, %s325_s17 }
  0x24   : > { %p329_p2 = pneg %p328_p1  ;;  %p335_p11 = por %p334_p12, %p333_p4 }
  0x26   : > { %p336_p6 = pnand %p335_p11, %p329_p2 }
  0x28   : > { %339 = shalt.err (!%p336_p6)
}
  0x29   : > { %273 = dma.hbm_to_vmem [thread:$0]  (!%p490_p13), %s486_s28, 128, %s494_s30, %s113_s4  }
  0x2a   : > { %p577_p9 = scmp.lt.s32.totalorder %s404_s12, 3  ;;  %p578_p7 = scmp.ge.s32.totalorder %s404_s12, 1 }
  0x2c   : > { %p129_p0 = pnand %p578_p7, %p577_p9 }
  0x2d   : > { %s521_s25 = sand.u32 (!%p129_p0), 1, %s396_s10   ;;  %p579_p6 = scmp.ne.s32.totalorder (!%p129_p0), %s573_s20, 0 }
  0x2e   : > { %132 = sbr.rel (%p129_p0) target bundleno = 77 (0x4d), region = 28  ;;  %s259_s26 = sshll.u32 (!%p129_p0), %s521_s25, 3 }
  0x2f   : > { %s135_s27 = scalar_lea.sflag (!%p129_p0), [#allocation3], %s521_s25  ;;  %s138_s29 = scalar_lea.vmem (!%p129_p0), [#allocation2], %s259_s26 }
  0x33   : > { %383 = dma.done.wait (%p579_p6), %s135_s27, 128  }
  0x34   : > { %385 = vsyncadd (%p579_p6), %s135_s27, 4294967168  ;;  %s158_s28 = scalar_lea.vmem [#allocation5], %s259_s26  ;;  %s263_s3 = sshll.u32 %s444_s13, 7  ;;  %v159_v0 = vld [vmem:[%s138_s29] sm:$0xff] }
  0x35   : > { %s183_s30 = sshll.u32 %s158_s28, 4  ;;  %v261_v1 = vld [vmem:[%s568_s1] ss:$0 sm:$0xff]  ;;  %s181_s8 = scalar_lea.hbm %s569_s2, %s263_s3  ;;  %s184_s30 = int_to_ptr.vmem [resolvable:$true] %s183_s30 }
  0x36   : > { %v167_v2 = vadd.f32 %v261_v1, %v159_v0  ;;  %s170_s20 = scalar_lea.sflag [#allocation4], %s521_s25  ;;  %s340_s14 = scalar_lea.vmem %s184_s30, 128 }
  0x37   : > { %p341_p11 = scmp.ne.s32.totalorder %s184_s30, %s340_s14  ;;  %p580_p12 = scmp.ne.s32.totalorder %s574_s21, 0 }
  0x38   : > { %168 = vst [vmem:[%s158_s28] sm:$0xff] %v167_v2  ;;  %s407_s16 = smov [#allocation5]  }
  0x39   : > { %p342_p13 = pnand %p341_p11, %p580_p12  ;;  %s344_s13 = sshll.u32 %s407_s16, 4  ;;  %s345_s13 = int_to_ptr.vmem [resolvable:$false] %s344_s13 }
  0x3a   : > { %s346_s17 = scalar_lea.vmem %s345_s13, 256  ;;  %p347_p3 = scmp.lt.s32.totalorder %s184_s30, %s345_s13 }
  0x3b   : > { %p343_p1 = pneg %p342_p13  ;;  %p348_p5 = scmp.lt.s32.totalorder %s346_s17, %s340_s14 }
  0x3d   : > { %p349_p8 = por %p348_p5, %p347_p3 }
  0x3f   : > { %p350_p10 = pnand %p349_p8, %p343_p1 }
  0x41   : > { %353 = shalt.err (!%p350_p10)
}
  0x42   : > { %s354_s19 = scalar_lea.hbm %s181_s8, 128  ;;  %s358_s25 = scalar_lea.hbm %s569_s2, 256 }
  0x43   : > { %p355_p2 = scmp.ne.s32.totalorder %s181_s8, %s354_s19  ;;  %p359_p7 = scmp.lt.s32.totalorder %s181_s8, %s569_s2 }
  0x44   : > { %p360_p0 = scmp.lt.s32.totalorder %s358_s25, %s354_s19 }
  0x45   : > { %p356_p4 = pnand %p355_p2, %p580_p12 }
  0x46   : > { %p361_p6 = por %p360_p0, %p359_p7 }
  0x47   : > { %p357_p9 = pneg %p356_p4 }
  0x49   : > { %p362_p11 = pnand %p361_p6, %p357_p9 }
  0x4b   : > { %365 = shalt.err (!%p362_p11)
}
  0x4c   : > { %268 = dma.vmem_to_hbm [thread:$0]  (%p580_p12), %s184_s30, 128, %s181_s8, %s170_s20  }
  0x4d PF: > { %s195_s29 = sand.u32 1, %s392_s9   ;;  %p581_p13 = scmp.ne.s32.totalorder %s575_s22, 0 }
  0x4e   : > { %p582_p1 = scmp.ge.s32.totalorder %s404_s12, 2  ;;  %s196_s28 = scalar_lea.sflag [#allocation4], %s195_s29 }
  0x50   : > { %p275_p3 = pnand %p582_p1, %p581_p13 }
  0x52   : > { %p276_p5 = pneg %p275_p3 }
  0x54   : > { %387 = dma.done.wait (%p276_p5), %s196_s28, 128  }
  0x55   : > { %389 = vsyncadd (%p276_p5), %s196_s28, 4294967168  ;;  %p15_p8 = scmp.ge.s32.totalorder %s448_s15, 4   ;;  %s583_s9 = smov %s396_s10 }
  0x56   : > { %s584_s10 = smov %s400_s11  ;;  %s585_s11 = smov %s460_s18 }
  0x57   : > { %s586_s12 = smov %s448_s15  ;;  %17 = sbr.rel (!%p15_p8) target bundleno = 5 (0x5), region = 73 }
  0x5c   :  { %201 = vsyncpa [#allocation3], 1 }
  0x5d   :  { %203 = vsyncpa [#allocation3 + $0x1], 1 }
  0x5e   :  { %204 = vsyncpa [#allocation4], 1 }
  0x5f   :  { %206 = vsyncpa [#allocation4 + $0x1], 1 }

// kernel: tpu_custom_call.1
= control target key start
LH: loop header
LB: loop body
LE: loop exit
PB: predicated region body
PF: predicated region fallthrough
CT: control target
= control target key end

     0   :  { %8 = vsyncpa [#allocation3], 0  ;;  %s215_s0 = inlined_call_operand.hbm [shape: bf16[16,32], index: 0, kind: input, shape index: {}]   ;;  %s216_s1 = inlined_call_operand.vmem [shape: f32[1,32], index: 1, kind: input, shape index: {}]   ;;  %s217_s2 = inlined_call_operand.vmem [shape: f32[1,32], index: 2, kind: input, shape index: {}]   ;;  %s218_s3 = inlined_call_operand.hbm [shape: bf16[16,32], index: 3, kind: output, shape index: {}]  }
   0x1   :  { %9 = vsyncpa [#allocation4], 0  ;;  %s169_s12 = smov [#allocation2]  }
   0x2   :  { %s15_s13 = sshll.u32 %s169_s12, 4  ;;  %s16_s13 = int_to_ptr.vmem [resolvable:$true] %s15_s13 }
   0x3   :  { %s133_s14 = scalar_lea.vmem %s16_s13, 128  ;;  %p138_p1 = scmp.lt.s32.totalorder %s16_s13, %s16_s13 }
   0x4   :  { %p134_p0 = scmp.ne.s32.totalorder %s16_s13, %s133_s14  ;;  %p139_p2 = scmp.lt.s32.totalorder %s133_s14, %s133_s14 }
   0x6   :  { %p140_p3 = por %p139_p2, %p138_p1 }
   0x8   :  { %p141_p4 = pnand %p140_p3, %p134_p0 }
   0xa   :  { %144 = shalt.err (!%p141_p4)
}
   0xb   :  { %s170_s15 = smov 64   ;;  %s171_s16 = smov 4  }
   0xc   :  { %21 = dma.hbm_to_vmem [thread:$0]  %s215_s0, 128, %s16_s13, [#allocation3], %s170_s15, %s170_s15, %s171_s16  }
   0xd   :  { %165 = dma.done.wait [#allocation3], 128  }
   0xe   :  { %166 = vsyncadd [#allocation3], 4294967168  ;;  %v114_v0 = vld [vmem:[#allocation2] sm:$0xff]   ;;  %vm35_vm0 = vcmask 261120   ;;  %vm87_vm1 = vcmask 257024   ;;  %s172_s22 = smov [#allocation5]  }
   0xf   :  { %v115_v1 = vunpack.c.l.bf16 %v114_v0  ;;  %v116_v2 = vunpack.c.h.bf16 %v114_v0  ;;  %v107_v22 = vld [vmem:[%s216_s1] ss:$0 sm:$0xff]  ;;  %s95_s23 = sshll.u32 %s172_s22, 4  ;;  %s96_s23 = int_to_ptr.vmem [resolvable:$true] %s95_s23 }
  0x10   :  { %v108_v24 = vld [vmem:[%s217_s2] ss:$0 sm:$0xff]  ;;  %s145_s1 = scalar_lea.vmem %s96_s23, 128  ;;  %p150_p6 = scmp.lt.s32.totalorder %s96_s23, %s96_s23 }
  0x11   :  { %v36_v3 = vsel %vm35_vm0, %v115_v1, 0.0  ;;  %v39_v4 = vsel %vm35_vm0, %v116_v2, 0.0  ;;  %p146_p5 = scmp.ne.s32.totalorder %s96_s23, %s145_s1  ;;  %p151_p7 = scmp.lt.s32.totalorder %s145_s1, %s145_s1 }
  0x12   :  { %37 = vadd.xlane.f32.xlu0 %v36_v3 }
  0x13   :  { %p152_p8 = por %p151_p7, %p150_p6 }
  0x15   :  { %p153_p9 = pnand %p152_p8, %p146_p5 }
  0x16   :  { %40 = vadd.xlane.f32.xlu0 %v39_v4 }
  0x9b   :  { %v38_v5 = vpop.xlane.xlu0 %37 }
  0x9c   :  { %v43_v6 = vmul.f32 0.03125, %v38_v5 }
  0x9e   :  { %v45_v7 = vsub.f32 %v115_v1, %v43_v6 }
  0x9f   :  { %v41_v8 = vpop.xlane.xlu0 %40 }
  0xa0   :  { %v44_v9 = vmul.f32 0.03125, %v41_v8  ;;  %v47_v10 = vmul.f32 %v45_v7, %v45_v7 }
  0xa2   :  { %v46_v11 = vsub.f32 %v116_v2, %v44_v9  ;;  %v49_v12 = vsel %vm35_vm0, %v47_v10, 0.0 }
  0xa3   :  { %50 = vadd.xlane.f32.xlu1 %v49_v12 }
  0xa4   :  { %v48_v13 = vmul.f32 %v46_v11, %v46_v11 }
  0xa6   :  { %v52_v14 = vsel %vm35_vm0, %v48_v13, 0.0 }
  0xa7   :  { %53 = vadd.xlane.f32.xlu1 %v52_v14 }
 0x12c   :  { %v51_v15 = vpop.xlane.xlu1 %50 }
 0x12d   :  { %v55_v16 = vmul.f32 0.03125, %v51_v15 }
 0x12f   :  { %v57_v17 = vadd.f32 1e-05, %v55_v16 }
 0x130   :  { %v54_v18 = vpop.xlane.xlu1 %53 }
 0x131   :  { %121 = vrsqrt.f32 %v57_v17  ;;  %v56_v19 = vmul.f32 0.03125, %v54_v18 }
 0x133   :  { %v58_v20 = vadd.f32 1e-05, %v56_v19 }
 0x135   :  { %123 = vrsqrt.f32 %v58_v20 }
 0x13e   :  { %v122_v21 = vpop.eup %121 }
 0x13f   :  { %v61_v23 = vmul.f32 %v122_v21, %v45_v7 }
 0x141   :  { %v69_v25 = vmul.f32 %v107_v22, %v61_v23 }
 0x142   :  { %v124_v26 = vpop.eup %123 }
 0x143   :  { %v62_v27 = vmul.f32 %v124_v26, %v46_v11  ;;  %v77_v28 = vadd.f32 %v108_v24, %v69_v25 }
 0x145   :  { %v70_v29 = vmul.f32 %v107_v22, %v62_v27  ;;  %v111_v30 = vpack.c.bf16 %v77_v28, %v77_v28 }
 0x147   :  { %v78_v31 = vadd.f32 %v108_v24, %v70_v29  ;;  %88 = vst.msk [vmem:[#allocation5] sm:$0xf] %vm87_vm1, %v111_v30 }
 0x149   :  { %v112_v32 = vpack.c.bf16 %v78_v31, %v78_v31 }
 0x14b   :  { %89 = vst.msk [vmem:[#allocation5 + $0x4] sm:$0xf] %vm87_vm1, %v112_v32 }
 0x14c   :  { %156 = shalt.err (!%p153_p9)
}
 0x14d   :  { %101 = dma.vmem_to_hbm [thread:$0]  %s96_s23, 128, %s218_s3, [#allocation4], %s170_s15, %s170_s15, %s171_s16  }
 0x14e   :  { %167 = dma.done.wait [#allocation4], 128  }
 0x14f   :  { %168 = vsyncadd [#allocation4], 4294967168 }
 0x150   :  { %105 = vsyncpa [#allocation3], 1 }
 0x151   :  { %106 = vsyncpa [#allocation4], 1 }

</bundles_post_ra>
